<compile_context>
chip_gen: v6e
topology: v6e:2x2x1
jax: 0.10.0
libtpu: 0.0.40
codegen_flags: <defaults>
</compile_context>

<pallas_src>
import functools

import jax
import jax.numpy as jnp
from jax.experimental import pallas as pl
from jax.experimental.pallas import tpu as pltpu

INPUT_DIM = 512
HIDDEN_DIM = 128
NUM_CLASSES = 1
NEG_SLOPE = 0.01  # nn.LeakyReLU() default

# Default batch tile. 4096 f32 rows = 8 MiB per x tile (16 MiB double-buffered),
# which keeps per-step DMA time far above the ~0.35us grid-step overhead on
# v5e/v6e/v7x while staying well inside physical VMEM everywhere.
BATCH_TILE = 4096

# Covers the tb=4096 f32 x double-buffer (16 MiB) + in-kernel bf16 copy and
# f32 intermediates (~10 MiB) with headroom; above v5e's 16 MiB scoped default,
# below v7x's 64 MiB physical VMEM.
VMEM_LIMIT_BYTES = 48 * 1024 * 1024


def _round_up(n, m):
    return ((n + m - 1) // m) * m


def _leaky_relu(x, slope=NEG_SLOPE):
    # valid for 0 <= slope <= 1
    return jnp.maximum(x, slope * x)


def _choose_tb(B, batch_tile):
    """Pick the batch tile.

    Small batches: one tile equal to the full batch (block == full array, so no
    (8,128) divisibility constraints). Large batches: >= 4 tiles (2 per
    TensorCore on v7x), each a multiple of 256 rows so the lane-dense (1, tb)
    output block is 128-lane aligned, capped at `batch_tile`.
    """
    batch_tile = max(256, (batch_tile // 256) * 256)
    if B <= min(batch_tile, 1024):
        return B
    return min(batch_tile, max(256, _round_up(pl.cdiv(B, 4), 256)))


def mlp_kernel(x_ref, w1_ref, b1_ref, w2_ref, b2_ref, w3_ref, b3_ref, o_ref):
    # x arrives as f32 straight from HBM (single pass); cast to bf16 on the VPU,
    # hidden under the next tile's DMA.
    x_bf = x_ref[...].astype(jnp.bfloat16)

    # Layer 1: bf16 operands on the MXU, f32 accumulation.
    h1 = jnp.dot(x_bf, w1_ref[...], preferred_element_type=jnp.float32)
    h1 = _leaky_relu(h1 + b1_ref[...])
    # Dropout(0.1) -> identity in eval mode.

    # Layer 2: bf16 operands on the MXU, f32 accumulation.
    h2 = jnp.dot(h1.astype(jnp.bfloat16), w2_ref[...],
                 preferred_element_type=jnp.float32)
    h2 = _leaky_relu(h2 + b2_ref[...])
    # Dropout(0.1) -> identity in eval mode.

    # Layer 3 (128 -> 1): lane reduction on the VPU/XLU instead of a degenerate
    # N=1 MXU matmul. w3 is a (1, HIDDEN_DIM) f32 row; b3 is an SMEM scalar.
    # Result is stored lane-dense as a (1, tb) row -> unmasked 128-lane stores.
    logits = jnp.sum(h2 * w3_ref[...], axis=-1) + b3_ref[0]
    o_ref[...] = logits.reshape(1, -1).astype(o_ref.dtype)


def prepare_params(params):
    """One-time (outside jit) cast/reshape of params into kernel layout."""
    w1, b1, w2, b2, w3, b3 = params
    return (
        w1.astype(jnp.bfloat16),                              # (512, 128)
        b1.reshape(1, HIDDEN_DIM).astype(jnp.float32),        # (1, 128)
        w2.astype(jnp.bfloat16),                              # (128, 128)
        b2.reshape(1, HIDDEN_DIM).astype(jnp.float32),        # (1, 128)
        w3.reshape(1, HIDDEN_DIM).astype(jnp.float32),        # (1, 128) row
        b3.reshape(NUM_CLASSES).astype(jnp.float32),          # (1,) SMEM scalar
    )


@functools.partial(jax.jit, static_argnames=("as_probabilities", "batch_tile"))
def mlp_classifier_forward(x, prepared_params, as_probabilities=False,
                           batch_tile=BATCH_TILE):
    """Pallas-backed forward. x: (B, 512) f32. Returns (B, 1) logits/probs."""
    w1, b1, w2, b2, w3_row, b3 = prepared_params
    B = x.shape[0]

    tb = _choose_tb(B, batch_tile)
    grid = (pl.cdiv(B, tb),)

    out_row = pl.pallas_call(
        mlp_kernel,
        out_shape=jax.ShapeDtypeStruct((1, B), jnp.float32),
        grid_spec=pl.GridSpec(
            grid=grid,
            in_specs=[
                pl.BlockSpec((tb, INPUT_DIM), lambda i: (i, 0)),            # x tile (f32)
                pl.BlockSpec((INPUT_DIM, HIDDEN_DIM), lambda i: (0, 0)),    # W1 (bf16)
                pl.BlockSpec((1, HIDDEN_DIM), lambda i: (0, 0)),            # b1
                pl.BlockSpec((HIDDEN_DIM, HIDDEN_DIM), lambda i: (0, 0)),   # W2 (bf16)
                pl.BlockSpec((1, HIDDEN_DIM), lambda i: (0, 0)),            # b2
                pl.BlockSpec((1, HIDDEN_DIM), lambda i: (0, 0)),            # W3 row
                pl.BlockSpec(memory_space=pltpu.MemorySpace.SMEM),          # b3 scalar
            ],
            out_specs=pl.BlockSpec((1, tb), lambda i: (0, i)),              # lane-dense
        ),
        compiler_params=pltpu.CompilerParams(
            dimension_semantics=("parallel",),   # batch tiles shard across TCs (v7x)
            vmem_limit_bytes=VMEM_LIMIT_BYTES,
        ),
    )(x, w1, b1, w2, b2, w3_row, b3)

    out = out_row.reshape(B, NUM_CLASSES)  # (1,B) -> (B,1): contiguous, free

    if as_probabilities:
        if NUM_CLASSES > 1:
            out = jax.nn.softmax(out, axis=1)
        else:
            out = jax.nn.sigmoid(out)
    return out


def init_params(key):
    """Parameter init mirroring the module (weights stored as [in, out])."""
    k1, k2, k3, k4, k5, k6 = jax.random.split(key, 6)

    # Layer 1: kaiming_normal_(a=0.01, mode='fan_out'); fan_out = HIDDEN_DIM.
    gain = (2.0 / (1.0 + NEG_SLOPE ** 2)) ** 0.5
    std1 = gain / (HIDDEN_DIM ** 0.5)
    w1 = std1 * jax.random.normal(k1, (INPUT_DIM, HIDDEN_DIM), jnp.float32)
    bnd1 = 1.0 / (INPUT_DIM ** 0.5)
    b1 = jax.random.uniform(k2, (1, HIDDEN_DIM), jnp.float32, -bnd1, bnd1)

    bnd2 = 1.0 / (HIDDEN_DIM ** 0.5)
    w2 = jax.random.uniform(k3, (HIDDEN_DIM, HIDDEN_DIM), jnp.float32, -bnd2, bnd2)
    b2 = jax.random.uniform(k4, (1, HIDDEN_DIM), jnp.float32, -bnd2, bnd2)

    w3 = jax.random.uniform(k5, (HIDDEN_DIM, NUM_CLASSES), jnp.float32, -bnd2, bnd2)
    b3 = jax.random.uniform(k6, (1, NUM_CLASSES), jnp.float32, -bnd2, bnd2)

    return (w1, b1, w2, b2, w3, b3)


def reference_forward(x, params, as_probabilities=False):
    """Pure-JAX reference with the same bf16-operand / f32-accumulate recipe.

    Note: bf16 matmul operands differ from a pure-f32 PyTorch reference beyond
    ~1e-3; tolerance below assumes that is acceptable for this classifier head.
    """
    w1, b1, w2, b2, w3, b3 = params
    h1 = jnp.dot(x.astype(jnp.bfloat16), w1.astype(jnp.bfloat16),
                 preferred_element_type=jnp.float32)
    h1 = _leaky_relu(h1 + b1.reshape(1, HIDDEN_DIM))
    h2 = jnp.dot(h1.astype(jnp.bfloat16), w2.astype(jnp.bfloat16),
                 preferred_element_type=jnp.float32)
    h2 = _leaky_relu(h2 + b2.reshape(1, HIDDEN_DIM))
    out = jnp.sum(h2 * w3.reshape(1, HIDDEN_DIM), axis=-1, keepdims=True) \
        + b3.reshape(1, NUM_CLASSES)
    if as_probabilities:
        out = jax.nn.sigmoid(out) if NUM_CLASSES == 1 else jax.nn.softmax(out, axis=1)
    return out


if __name__ == "__main__":
    key = jax.random.PRNGKey(0)
    kx, kx2, kp = jax.random.split(key, 3)
    params = init_params(kp)
    prepared = prepare_params(params)   # one-time cast/reshape, outside jit

    # Case 1: small batch -> single grid step (block == full array).
    B1 = 8
    x1 = jax.random.normal(kx, (B1, INPUT_DIM), jnp.float32)
    logits1 = mlp_classifier_forward(x1, prepared, as_probabilities=False)
    probs1 = mlp_classifier_forward(x1, prepared, as_probabilities=True)
    jax.block_until_ready(logits1)
    jax.block_until_ready(probs1)
    assert logits1.shape == (B1, NUM_CLASSES)
    assert jnp.allclose(logits1, reference_forward(x1, params), atol=2e-3, rtol=2e-3)
    assert jnp.allclose(probs1, reference_forward(x1, params, as_probabilities=True),
                        atol=2e-3, rtol=2e-3)

    # Case 2: multi-tile grid with a partial (padded) last tile and lane-dense
    # 256-wide output blocks (batch_tile forced small to keep the test tiny).
    B2 = 600
    x2 = jax.random.normal(kx2, (B2, INPUT_DIM), jnp.float32)
    logits2 = mlp_classifier_forward(x2, prepared, as_probabilities=False,
                                     batch_tile=256)
    jax.block_until_ready(logits2)
    assert logits2.shape == (B2, NUM_CLASSES)
    assert jnp.allclose(logits2, reference_forward(x2, params), atol=2e-3, rtol=2e-3)

    print("KERNEL_OK")
</pallas_src>

<mosaic_0001>
module attributes {stable_mosaic.version = 11 : i64} {
  func.func @mlp_kernel(%arg0: i32, %arg1: memref<8x512xf32, #tpu.memory_space<vmem>>, %arg2: memref<512x128xbf16, #tpu.memory_space<vmem>>, %arg3: memref<1x128xf32, #tpu.memory_space<vmem>>, %arg4: memref<128x128xbf16, #tpu.memory_space<vmem>>, %arg5: memref<1x128xf32, #tpu.memory_space<vmem>>, %arg6: memref<1x128xf32, #tpu.memory_space<vmem>>, %arg7: memref<1xf32, #tpu.memory_space<smem>>, %arg8: memref<1x8xf32, #tpu.memory_space<vmem>>) attributes {dimension_semantics = [#tpu.dimension_semantics<parallel>], iteration_bounds = array<i64: 1>, scalar_prefetch = 0 : i64, scratch_operands = 0 : i64, tpu.core_type = #tpu.core_type<tc>, window_params = [{transform_indices = @transform_0, window_bounds = array<i64: 8, 512>}, {pipeline_mode = #tpu.pipeline_mode<synchronous>, transform_indices = @transform_1, window_bounds = array<i64: 512, 128>}, {pipeline_mode = #tpu.pipeline_mode<synchronous>, transform_indices = @transform_2, window_bounds = array<i64: 1, 128>}, {pipeline_mode = #tpu.pipeline_mode<synchronous>, transform_indices = @transform_3, window_bounds = array<i64: 128, 128>}, {pipeline_mode = #tpu.pipeline_mode<synchronous>, transform_indices = @transform_4, window_bounds = array<i64: 1, 128>}, {pipeline_mode = #tpu.pipeline_mode<synchronous>, transform_indices = @transform_5, window_bounds = array<i64: 1, 128>}, {transform_indices = @transform_6, window_bounds = array<i64: 1>}, {transform_indices = @transform_7, window_bounds = array<i64: 1, 8>}]} {
    %c0 = arith.constant 0 : index
    %c0_0 = arith.constant 0 : index
    %0 = vector.load %arg1[%c0, %c0_0] : memref<8x512xf32, #tpu.memory_space<vmem>>, vector<8x512xf32>
    %1 = arith.truncf %0 : vector<8x512xf32> to vector<8x512xbf16>
    %c0_1 = arith.constant 0 : index
    %c0_2 = arith.constant 0 : index
    %2 = vector.load %arg2[%c0_1, %c0_2] : memref<512x128xbf16, #tpu.memory_space<vmem>>, vector<512x128xbf16>
    %cst = arith.constant dense<0.000000e+00> : vector<8x128xf32>
    %3 = tpu.matmul %1, %2, %cst {dimension_numbers = #tpu.dot_dimension_numbers<[1], [0], [0], [1], [0, 0, 1, 1], [], []>} : vector<8x512xbf16>, vector<512x128xbf16>, vector<8x128xf32> -> vector<8x128xf32>
    %c0_3 = arith.constant 0 : index
    %c0_4 = arith.constant 0 : index
    %4 = vector.load %arg3[%c0_3, %c0_4] : memref<1x128xf32, #tpu.memory_space<vmem>>, vector<1x128xf32>
    %5 = vector.broadcast %4 : vector<1x128xf32> to vector<8x128xf32>
    %6 = arith.addf %3, %5 : vector<8x128xf32>
    %cst_5 = arith.constant 0.00999999977 : f32
    %7 = vector.broadcast %cst_5 : f32 to vector<8x128xf32>
    %8 = arith.mulf %7, %6 : vector<8x128xf32>
    %9 = arith.maximumf %6, %8 : vector<8x128xf32>
    %10 = arith.truncf %9 : vector<8x128xf32> to vector<8x128xbf16>
    %c0_6 = arith.constant 0 : index
    %c0_7 = arith.constant 0 : index
    %11 = vector.load %arg4[%c0_6, %c0_7] : memref<128x128xbf16, #tpu.memory_space<vmem>>, vector<128x128xbf16>
    %cst_8 = arith.constant dense<0.000000e+00> : vector<8x128xf32>
    %12 = tpu.matmul %10, %11, %cst_8 {dimension_numbers = #tpu.dot_dimension_numbers<[1], [0], [0], [1], [0, 0, 1, 1], [], []>} : vector<8x128xbf16>, vector<128x128xbf16>, vector<8x128xf32> -> vector<8x128xf32>
    %c0_9 = arith.constant 0 : index
    %c0_10 = arith.constant 0 : index
    %13 = vector.load %arg5[%c0_9, %c0_10] : memref<1x128xf32, #tpu.memory_space<vmem>>, vector<1x128xf32>
    %14 = vector.broadcast %13 : vector<1x128xf32> to vector<8x128xf32>
    %15 = arith.addf %12, %14 : vector<8x128xf32>
    %cst_11 = arith.constant 0.00999999977 : f32
    %16 = vector.broadcast %cst_11 : f32 to vector<8x128xf32>
    %17 = arith.mulf %16, %15 : vector<8x128xf32>
    %18 = arith.maximumf %15, %17 : vector<8x128xf32>
    %c0_12 = arith.constant 0 : index
    %c0_13 = arith.constant 0 : index
    %19 = vector.load %arg6[%c0_12, %c0_13] : memref<1x128xf32, #tpu.memory_space<vmem>>, vector<1x128xf32>
    %20 = vector.broadcast %19 : vector<1x128xf32> to vector<8x128xf32>
    %21 = arith.mulf %18, %20 : vector<8x128xf32>
    %cst_14 = arith.constant dense<0.000000e+00> : vector<8xf32>
    %22 = vector.multi_reduction <add>, %21, %cst_14 [1] : vector<8x128xf32> to vector<8xf32>
    %c0_15 = arith.constant 0 : index
    %23 = memref.load %arg7[%c0_15] : memref<1xf32, #tpu.memory_space<smem>>
    %24 = vector.broadcast %23 : f32 to vector<8xf32>
    %25 = arith.addf %22, %24 : vector<8xf32>
    %26 = vector.shape_cast %25 : vector<8xf32> to vector<1x8xf32>
    %c0_16 = arith.constant 0 : index
    %c0_17 = arith.constant 0 : index
    %27 = vector.load %arg8[%c0_16, %c0_17] : memref<1x8xf32, #tpu.memory_space<vmem>>, vector<1x8xf32>
    tpu.vector_store %arg8[%c0_16, %c0_17], %26 {strides = array<i32>} : memref<1x8xf32, #tpu.memory_space<vmem>>, vector<1x8xf32>,
    return
  }
  func.func @transform_0(%arg0: i32) -> (i32, i32) {
    %c0_i32 = arith.constant 0 : i32
    %c0_i32_0 = arith.constant 0 : i32
    return %arg0, %c0_i32 : i32, i32
  }
  func.func @transform_1(%arg0: i32) -> (i32, i32) {
    %c0_i32 = arith.constant 0 : i32
    %c0_i32_0 = arith.constant 0 : i32
    %c0_i32_1 = arith.constant 0 : i32
    return %c0_i32, %c0_i32_0 : i32, i32
  }
  func.func @transform_2(%arg0: i32) -> (i32, i32) {
    %c0_i32 = arith.constant 0 : i32
    %c0_i32_0 = arith.constant 0 : i32
    %c0_i32_1 = arith.constant 0 : i32
    return %c0_i32, %c0_i32_0 : i32, i32
  }
  func.func @transform_3(%arg0: i32) -> (i32, i32) {
    %c0_i32 = arith.constant 0 : i32
    %c0_i32_0 = arith.constant 0 : i32
    %c0_i32_1 = arith.constant 0 : i32
    return %c0_i32, %c0_i32_0 : i32, i32
  }
  func.func @transform_4(%arg0: i32) -> (i32, i32) {
    %c0_i32 = arith.constant 0 : i32
    %c0_i32_0 = arith.constant 0 : i32
    %c0_i32_1 = arith.constant 0 : i32
    return %c0_i32, %c0_i32_0 : i32, i32
  }
  func.func @transform_5(%arg0: i32) -> (i32, i32) {
    %c0_i32 = arith.constant 0 : i32
    %c0_i32_0 = arith.constant 0 : i32
    %c0_i32_1 = arith.constant 0 : i32
    return %c0_i32, %c0_i32_0 : i32, i32
  }
  func.func @transform_6(%arg0: i32) -> i32 {
    %c0_i32 = arith.constant 0 : i32
    %c0_i32_0 = arith.constant 0 : i32
    return %c0_i32 : i32
  }
  func.func @transform_7(%arg0: i32) -> (i32, i32) {
    %c0_i32 = arith.constant 0 : i32
    %c0_i32_0 = arith.constant 0 : i32
    return %c0_i32, %arg0 : i32, i32
  }
}

</mosaic_0001>

<bundles_post_ra>
// kernel: mlp_classifier_forward.1
= control target key start
LH: loop header
LB: loop body
LE: loop exit
PB: predicated region body
PF: predicated region fallthrough
CT: control target
= control target key end

     0   :  { %13 = vsyncpa [#allocation4], 0  ;;  %s896_s0 = inlined_call_operand.hbm [shape: f32[8,512], index: 0, kind: input, shape index: {}]   ;;  %s897_s1 = inlined_call_operand.hbm [shape: bf16[512,128], index: 1, kind: input, shape index: {}]   ;;  %s898_s2 = inlined_call_operand.vmem [shape: f32[1,128], index: 2, kind: input, shape index: {}]   ;;  %s899_s3 = inlined_call_operand.hbm [shape: bf16[128,128], index: 3, kind: input, shape index: {}]   ;;  %s900_s4 = inlined_call_operand.vmem [shape: f32[1,128], index: 4, kind: input, shape index: {}]   ;;  %s901_s5 = inlined_call_operand.vmem [shape: f32[1,128], index: 5, kind: input, shape index: {}]   ;;  %s902_s6 = inlined_call_operand.<no memory space> [shape: f32[1], index: 6, kind: input, shape index: {}]   ;;  %s903_s7 = inlined_call_operand.hbm [shape: f32[1,8], index: 7, kind: output, shape index: {}]  }
   0x1   :  { %14 = vsyncpa [#allocation7], 0 }
   0x2   :  { %15 = vsyncpa [#allocation5], 0  ;;  %s824_s24 = smov [#allocation6]  }
   0x3   :  { %s31_s25 = sshll.u32 %s824_s24, 4  ;;  %s32_s25 = int_to_ptr.vmem [resolvable:$true] %s31_s25 }
   0x4   :  { %s746_s26 = scalar_lea.vmem %s32_s25, 4096  ;;  %p751_p1 = scmp.lt.s32.totalorder %s32_s25, %s32_s25 }
   0x5   :  { %p747_p0 = scmp.ne.s32.totalorder %s32_s25, %s746_s26  ;;  %p752_p2 = scmp.lt.s32.totalorder %s746_s26, %s746_s26 }
   0x7   :  { %p753_p3 = por %p752_p2, %p751_p1 }
   0x9   :  { %p754_p4 = pnand %p753_p3, %p747_p0 }
   0xb   :  { %757 = shalt.err (!%p754_p4)
}
   0xc   :  { %s825_s27 = smov 64   ;;  %s826_s28 = smov 4  }
   0xd   :  { %37 = dma.hbm_to_vmem [thread:$0]  %s897_s1, 4096, %s32_s25, [#allocation7], %s825_s27, %s825_s27, %s826_s28  }
   0xe   :  { %s827_s8 = smov [#allocation3]   ;;  %s828_s10 = smov [#allocation8]  }
   0xf   :  { %s22_s9 = sshll.u32 %s827_s8, 4  ;;  %s45_s11 = sshll.u32 %s828_s10, 4  ;;  %s23_s9 = int_to_ptr.vmem [resolvable:$true] %s22_s9  ;;  %s46_s11 = int_to_ptr.vmem [resolvable:$true] %s45_s11 }
  0x10   :  { %s766_s12 = scalar_lea.vmem %s23_s9, 512  ;;  %p771_p6 = scmp.lt.s32.totalorder %s23_s9, %s23_s9 }
  0x11   :  { %p767_p5 = scmp.ne.s32.totalorder %s23_s9, %s766_s12  ;;  %p772_p7 = scmp.lt.s32.totalorder %s766_s12, %s766_s12 }
  0x13   :  { %p773_p8 = por %p772_p7, %p771_p6 }
  0x15   :  { %p774_p9 = pnand %p773_p8, %p767_p5 }
  0x17   :  { %777 = shalt.err (!%p774_p9)
}
  0x18   :  { %25 = dma.hbm_to_vmem [thread:$0]  %s896_s0, 512, %s23_s9, [#allocation4]  }
  0x19   :  { %s786_s15 = scalar_lea.vmem %s46_s11, 1024  ;;  %p791_p11 = scmp.lt.s32.totalorder %s46_s11, %s46_s11 }
  0x1a   :  { %p787_p10 = scmp.ne.s32.totalorder %s46_s11, %s786_s15  ;;  %p792_p12 = scmp.lt.s32.totalorder %s786_s15, %s786_s15 }
  0x1c   :  { %p793_p13 = por %p792_p12, %p791_p11 }
  0x1e   :  { %p794_p0 = pnand %p793_p13, %p787_p10 }
  0x20   :  { %797 = shalt.err (!%p794_p0)
}
  0x21   :  { %51 = dma.hbm_to_vmem [thread:$0]  %s899_s3, 1024, %s46_s11, [#allocation7], %s825_s27, %s825_s27, %s826_s28  }
  0x22   :  { %818 = dma.done.wait [#allocation4], 512  }
  0x23   :  { %819 = vsyncadd [#allocation4], 4294966784 }
  0x24   :  { %820 = dma.done.wait [#allocation7], 5120  }
  0x25   :  { %821 = vsyncadd [#allocation7], 4294962176  ;;  %v698_v0 = vld [vmem:[#allocation6 + $0x78] sm:$0xff]   ;;  %v702_v4 = vld [vmem:[#allocation6 + $0x70] sm:$0xff]   ;;  %v829_v39 = vmov 0.0   ;;  %vm830_vm0 = vmmov 0  }
  0x26   :  { %v699_v1 = vld [vmem:[#allocation6 + $0xf8] sm:$0xff]   ;;  %617 = vmatprep.subr.bf16.mxu0 %v698_v0  ;;  %v703_v5 = vld [vmem:[#allocation6 + $0xf0] sm:$0xff]   ;;  %v706_v8 = vld [vmem:[#allocation6 + $0x68] sm:$0xff]   ;;  %vm556_vm1 = vcmask 57344  }
  0x27   :  { %v700_v2 = vld [vmem:[#allocation6 + $0x38] sm:$0xff]   ;;  %639 = vmatprep.subr.bf16.mxu1 %v699_v1  ;;  %v704_v6 = vld [vmem:[#allocation6 + $0x30] sm:$0xff]   ;;  %v707_v9 = vld [vmem:[#allocation6 + $0xe8] sm:$0xff]  }
  0x28   :  { %v701_v3 = vld [vmem:[#allocation6 + $0xb8] sm:$0xff]   ;;  %618 = vmatpush3.bf16.msra.mxu0 %v700_v2  ;;  %v705_v7 = vld [vmem:[#allocation6 + $0xb0] sm:$0xff]   ;;  %v708_v10 = vld [vmem:[#allocation6 + $0x28] sm:$0xff]  }
  0x29   :  { %640 = vmatpush3.bf16.msra.mxu1 %v701_v3  ;;  %619 = vmatprep.subr.bf16.mxu0 %v702_v4  ;;  %v709_v11 = vld [vmem:[#allocation6 + $0xa8] sm:$0xff]   ;;  %v710_v12 = vld [vmem:[#allocation6 + $0x60] sm:$0xff]   ;;  %v714_v16 = vld [vmem:[#allocation6 + $0x58] sm:$0xff]  }
  0x2a   :  { %641 = vmatprep.subr.bf16.mxu1 %v703_v5  ;;  %v711_v13 = vld [vmem:[#allocation6 + $0xe0] sm:$0xff]   ;;  %v715_v17 = vld [vmem:[#allocation6 + $0xd8] sm:$0xff]   ;;  %v718_v20 = vld [vmem:[#allocation6 + $0x50] sm:$0xff]  }
  0x2b   :  { %v712_v14 = vld [vmem:[#allocation6 + $0x20] sm:$0xff]   ;;  %v716_v18 = vld [vmem:[#allocation6 + $0x18] sm:$0xff]   ;;  %v719_v21 = vld [vmem:[#allocation6 + $0xd0] sm:$0xff]  }
  0x2c   :  { %620 = vmatpush3.bf16.msra.mxu0 %v704_v6  ;;  %v713_v15 = vld [vmem:[#allocation6 + $0xa0] sm:$0xff]   ;;  %v717_v19 = vld [vmem:[#allocation6 + $0x98] sm:$0xff]   ;;  %v720_v22 = vld [vmem:[#allocation6 + $0x10] sm:$0xff]  }
  0x2d   :  { %642 = vmatpush3.bf16.msra.mxu1 %v705_v7  ;;  %621 = vmatprep.subr.bf16.mxu0 %v706_v8  ;;  %v721_v23 = vld [vmem:[#allocation6 + $0x90] sm:$0xff]   ;;  %v722_v24 = vld [vmem:[#allocation6 + $0x48] sm:$0xff]   ;;  %v726_v28 = vld [vmem:[#allocation6 + $0x40] sm:$0xff]  }
  0x2e   :  { %643 = vmatprep.subr.bf16.mxu1 %v707_v9  ;;  %v723_v25 = vld [vmem:[#allocation6 + $0xc8] sm:$0xff]   ;;  %v727_v29 = vld [vmem:[#allocation6 + $0xc0] sm:$0xff]   ;;  %v71_v33 = vld [vmem:[#allocation3 + $0x18] sm:$0xff] }
  0x2f   :  { %v724_v26 = vld [vmem:[#allocation6 + $0x8] sm:$0xff]   ;;  %v728_v30 = vld [vmem:[#allocation6] sm:$0xff]   ;;  %v75_v36 = vpack.c.bf16 %v71_v33, %v71_v33  ;;  %v70_v38 = vld [vmem:[#allocation3 + $0x10] sm:$0xff] }
  0x30   :  { %622 = vmatpush3.bf16.msra.mxu0 %v708_v10  ;;  %v725_v27 = vld [vmem:[#allocation6 + $0x88] sm:$0xff]   ;;  %v729_v31 = vld [vmem:[#allocation6 + $0x80] sm:$0xff]   ;;  %v74_v40 = vpack.c.bf16 %v70_v38, %v70_v38  ;;  %v730_v41 = vld [vmem:[#allocation8 + $0x38] sm:$0xff]  }
  0x31   :  { %644 = vmatpush3.bf16.msra.mxu1 %v709_v11  ;;  %623 = vmatprep.subr.bf16.mxu0 %v710_v12  ;;  %v69_v32 = vld [vmem:[#allocation3 + $0x8] sm:$0xff]  ;;  %v68_v34 = vld [vmem:[#allocation3] sm:$0xff]  ;;  %v731_v42 = vld [vmem:[#allocation8 + $0x30] sm:$0xff]   ;;  %v549_v11 = vlaneseq }
  0x32   :  { %645 = vmatprep.subr.bf16.mxu1 %v711_v13  ;;  %v73_v35 = vpack.c.bf16 %v69_v32, %v69_v32  ;;  %v72_v37 = vpack.c.bf16 %v68_v34, %v68_v34  ;;  %411 = vmatprep.mubr.bf16.mxu1 %v75_v36  ;;  %v732_v43 = vld [vmem:[#allocation8 + $0x28] sm:$0xff]   ;;  %v733_v44 = vld [vmem:[#allocation8 + $0x20] sm:$0xff]   ;;  %v734_v45 = vld [vmem:[#allocation8 + $0x18] sm:$0xff]  }
  0x33   :  { %v735_v46 = vld [vmem:[#allocation8 + $0x10] sm:$0xff]   ;;  %v736_v47 = vld [vmem:[#allocation8 + $0x8] sm:$0xff]   ;;  %v737_v48 = vld [vmem:[#allocation8] sm:$0xff]   ;;  %v550_v12 = vand.u32 127, %v549_v11  ;;  %v552_v13 = vshrl.u32 %v549_v11, 7 }
  0x34   :  { %624 = vmatpush3.bf16.msra.mxu0 %v712_v14  ;;  %371 = vmatprep.mubr.bf16.mxu0 %v73_v35  ;;  %v574_v51 = vld [vmem:[%s898_s2] ss:$0 sm:$0xff]  ;;  %v546_v14 = vstv %s902_s6 }
  0x35   :  { %646 = vmatpush3.bf16.msra.mxu1 %v713_v15  ;;  %625 = vmatprep.subr.bf16.mxu0 %v714_v16  ;;  %v607_v1 = vld [vmem:[%s900_s4] ss:$0 sm:$0xff]  ;;  %v553_v15 = vsub.s32 %v550_v12, %v552_v13  ;;  %s831_s4 = smov [#allocation9]  }
  0x36   :  { %647 = vmatprep.subr.bf16.mxu1 %v715_v17  ;;  %v616_v7 = vld [vmem:[%s901_s5] ss:$0 sm:$0xff]  ;;  %s564_s22 = sshll.u32 %s831_s4, 4  ;;  %s565_s22 = int_to_ptr.vmem [resolvable:$true] %s564_s22 }
  0x37   :  { %s798_s5 = scalar_lea.vmem %s565_s22, 16  ;;  %s802_s23 = scalar_lea.vmem %s565_s22, 32 }
  0x38   :  { %626 = vmatpush3.bf16.msra.mxu0 %v716_v18  ;;  %p799_p1 = scmp.ne.s32.totalorder %s565_s22, %s798_s5  ;;  %p803_p2 = scmp.lt.s32.totalorder %s565_s22, %s565_s22 }
  0x39   :  { %648 = vmatpush3.bf16.msra.mxu1 %v717_v19  ;;  %627 = vmatprep.subr.bf16.mxu0 %v718_v20  ;;  %p804_p3 = scmp.lt.s32.totalorder %s802_s23, %s798_s5 }
  0x3a   :  { %649 = vmatprep.subr.bf16.mxu1 %v719_v21 }
  0x3b   :  { %p805_p4 = por %p804_p3, %p803_p2 }
  0x3c   :  { %628 = vmatpush3.bf16.msra.mxu0 %v720_v22 }
  0x3d   :  { %650 = vmatpush3.bf16.msra.mxu1 %v721_v23  ;;  %629 = vmatprep.subr.bf16.mxu0 %v722_v24  ;;  %p806_p5 = pnand %p805_p4, %p799_p1 }
  0x3e   :  { %651 = vmatprep.subr.bf16.mxu1 %v723_v25 }
  0x40   :  { %630 = vmatpush3.bf16.msra.mxu0 %v724_v26 }
  0x41   :  { %652 = vmatpush3.bf16.msra.mxu1 %v725_v27  ;;  %631 = vmatprep.subr.bf16.mxu0 %v726_v28 }
  0x42   :  { %653 = vmatprep.subr.bf16.mxu1 %v727_v29 }
  0x44   :  { %632 = vmatpush3.bf16.msra.mxu0 %v728_v30 }
  0x45   :  { %654 = vmatpush3.bf16.msra.mxu1 %v729_v31  ;;  %670 = vmatprep.subr.bf16.mxu0 %v829_v39 }
  0x47   :  { %372 = vmatmul.mubr.bf16.vlgmr.msra.gmra.mxu0 %v72_v37 }
  0x48   :  { %412 = vmatmul.mubr.bf16.vlgmr.msra.gmra.mxu1 %v74_v40  ;;  %671 = vmatpush3.bf16.msra.mxu0 %v730_v41 }
  0x49   :  { %672 = vmatprep.subr.bf16.mxu0 %v829_v39  ;;  %686 = vmatprep.mubr.msk.bf16.mxu0 %vm830_vm0, %v829_v39 }
  0x4c   :  { %673 = vmatpush3.bf16.msra.mxu0 %v731_v42 }
  0x4d   :  { %674 = vmatprep.subr.bf16.mxu0 %v829_v39 }
  0x50   :  { %675 = vmatpush3.bf16.msra.mxu0 %v732_v43 }
  0x51   :  { %676 = vmatprep.subr.bf16.mxu0 %v829_v39 }
  0x54   :  { %677 = vmatpush3.bf16.msra.mxu0 %v733_v44 }
  0x55   :  { %678 = vmatprep.subr.bf16.mxu0 %v829_v39 }
  0x58   :  { %679 = vmatpush3.bf16.msra.mxu0 %v734_v45 }
  0x59   :  { %680 = vmatprep.subr.bf16.mxu0 %v829_v39 }
  0x5c   :  { %681 = vmatpush3.bf16.msra.mxu0 %v735_v46 }
  0x5d   :  { %682 = vmatprep.subr.bf16.mxu0 %v829_v39 }
  0x60   :  { %683 = vmatpush3.bf16.msra.mxu0 %v736_v47 }
  0x61   :  { %684 = vmatprep.subr.bf16.mxu0 %v829_v39 }
  0x64   :  { %685 = vmatpush3.bf16.msra.mxu0 %v737_v48 }
 0x107   :  { %v633_v49 = vpop.f32.mrf.mxu0 }
 0x108   :  { %v655_v50 = vpop.f32.mrf.mxu1 }
 0x109   :  { %v634_v52 = vpop.f32.mrf.mxu0 }
 0x10a   :  { %v656_v53 = vpop.f32.mrf.mxu1  ;;  %v635_v54 = vadd.f32 %v634_v52, %v633_v49 }
 0x10b   :  { %v636_v55 = vpop.f32.mrf.mxu0  ;;  %v657_v58 = vadd.f32 %v656_v53, %v655_v50 }
 0x10c   :  { %v658_v56 = vpop.f32.mrf.mxu1  ;;  %v374_v57 = vadd.f32 %v635_v54, %v574_v51 }
 0x10d   :  { %v637_v59 = vpop.f32.mrf.mxu0 }
 0x10e   :  { %v659_v60 = vpop.f32.mrf.mxu1  ;;  %v414_v61 = vadd.f32 %v657_v58, %v374_v57 }
 0x110   :  { %v419_v62 = vmul.f32 0.01, %v414_v61 }
 0x112   :  { %v420_v63 = vmax.f32 %v414_v61, %v419_v62 }
 0x114   :  { %v421_v0 = vpack.c.bf16 %v420_v63, %v420_v63 }
 0x116   :  { %687 = vmatmul.mubr.bf16.vlgmr.msra.gmra.mxu0 %v421_v0 }
 0x1d6   :  { %v527_v2 = vpop.f32.mrf.mxu0 }
 0x1d7   :  { %v528_v3 = vadd.f32 %v607_v1, %v527_v2 }
 0x1d8   :  { %v688_v4 = vpop.f32.mrf.mxu0 }
 0x1d9   :  { %v533_v5 = vmul.f32 0.01, %v528_v3 }
 0x1da   :  { %v530_v6 = vpop.f32.mrf.mxu0 }
 0x1db   :  { %v534_v8 = vmax.f32 %v528_v3, %v533_v5 }
 0x1dc   :  { %v689_v9 = vpop.f32.mrf.mxu0 }
 0x1dd   :  { %v542_v10 = vmul.f32 %v616_v7, %v534_v8 }
 0x1df   :  { %543 = vadd.xlane.f32.xlu0 %v542_v10 }
 0x268   :  { %v544_v16 = vpop.xlane.xlu0 %543 }
 0x269   :  { %v547_v17 = vadd.f32 %v546_v14, %v544_v16 }
 0x26b   :  { %v554_v18 = vrot.slane %v547_v17, %v553_v15 }
 0x26d   :  { %557 = vst.msk [vmem:[#allocation9] sm:$0x1] %vm556_vm1, %v554_v18 }
 0x26e   :  { %809 = shalt.err (!%p806_p5)
}
 0x26f   :  { %567 = dma.vmem_to_hbm [thread:$0]  %s565_s22, 16, %s903_s7, [#allocation5]  }
 0x270   :  { %822 = dma.done.wait [#allocation5], 16  }
 0x271   :  { %823 = vsyncadd [#allocation5], 4294967280 }
 0x272   :  { %571 = vsyncpa [#allocation4], 1 }
 0x273   :  { %572 = vsyncpa [#allocation7], 1 }
 0x274   :  { %573 = vsyncpa [#allocation5], 1 }

</bundles_post_ra>
